<compile_context>
chip_gen: v7x
topology: tpu7x:2x2x1
jax: 0.10.0
libtpu: 0.0.40
codegen_flags: <defaults>
</compile_context>

<pallas_src>
import functools

import jax
import jax.numpy as jnp
from jax import lax
from jax.experimental import pallas as pl
from jax.experimental.pallas import tpu as pltpu


def _round_up(x, m):
    return ((x + m - 1) // m) * m


def _disc_kernel(wc_ref, b_ref, hpl_ref, hmi_ref, opl_ref, omi_ref):
    """wc_ref:  (pack, Dp)  streaming dtype, VMEM (resident across the grid)
    b_ref:   (1,)        f32, SMEM
    hpl_ref: (tn, Dp)    streaming dtype (tile of packed h_pl)
    hmi_ref: (tn, Dp)    streaming dtype (tile of packed h_mi)
    opl_ref: (pack, tn)  f32 lane-dense scores for h_pl
    omi_ref: (pack, tn)  f32 lane-dense scores for h_mi
    """
    b = b_ref[0]                      # scalar bias from SMEM
    wc = wc_ref[...]                  # already in the streaming dtype (cast hoisted)
    dn = (((1,), (1,)), ((), ()))     # contract the packed feature axis
    # Lane-dense (pack, tn) results straight off the MXU (f32 accumulation).
    opl_ref[...] = lax.dot_general(wc, hpl_ref[...], dn,
                                   preferred_element_type=jnp.float32) + b
    omi_ref[...] = lax.dot_general(wc, hmi_ref[...], dn,
                                   preferred_element_type=jnp.float32) + b


@functools.partial(jax.jit, static_argnames=("tile_bytes", "vmem_limit_bytes"))
def discriminator_forward(c, h_pl, h_mi, W, b, s_bias1=None, s_bias2=None,
                          tile_bytes=4 << 20, vmem_limit_bytes=None):
    """c: (n_h,), h_pl/h_mi: (N, n_h), W: (1, n_h, n_h), b: (1,) -> logits (2N,) f32.

    Note: wc = W[0] @ c is computed in f32 and then rounded once to the streaming
    dtype of h (e.g. bf16) — a small, documented deviation from torch's f32
    nn.Bilinear accumulation path.
    """
    N, n_h = h_pl.shape
    assert h_mi.shape == (N, n_h), "h_pl and h_mi must have the same shape"
    if h_mi.dtype != h_pl.dtype:
        # Keep a single streaming dtype (explicit, instead of silent promotion).
        h_mi = h_mi.astype(h_pl.dtype)
    h_dtype = h_pl.dtype
    itemsize = jnp.dtype(h_dtype).itemsize

    # Hoisted matvec (f32, once): wc = W[0] @ c.
    wc = jnp.dot(W.reshape(n_h, n_h).astype(jnp.float32),
                 c.reshape(n_h).astype(jnp.float32))                    # (n_h,)

    # 128-lane packing: fold `pack` consecutive feature rows into one full-lane
    # row via a free row-major reshape (no HBM copy under jit).
    pack = 1
    if n_h <= 128 and 128 % n_h == 0 and N % (128 // n_h) == 0:
        pack = 128 // n_h
    Dp = n_h * pack
    n_rows = N // pack

    # Block-diagonal packed weight (pack, Dp); pre-cast ONCE to the streaming dtype.
    wc_p = jnp.kron(jnp.eye(pack, dtype=jnp.float32),
                    wc.reshape(1, n_h)).astype(h_dtype)                 # (pack, Dp)
    b1 = jnp.asarray(b, jnp.float32).reshape(1)

    h_pl2 = h_pl.reshape(n_rows, Dp)    # free views, no stack / no pad copies
    h_mi2 = h_mi.reshape(n_rows, Dp)

    # Tile rows so that ~tile_bytes of h (both inputs) stream per grid step.
    tn = max(128, (int(tile_bytes) // (2 * Dp * itemsize)) // 128 * 128)
    tn = min(tn, _round_up(n_rows, 128))
    grid = (pl.cdiv(n_rows, tn),)

    # VMEM budget check: double-buffered h tiles + (tiny) outputs + resident wc.
    step_bytes = 2 * tn * Dp * itemsize
    vmem_need = 2 * step_bytes + 4 * pack * tn * 4 + 2 * pack * Dp * 4 + (1 << 20)
    if vmem_limit_bytes is None and vmem_need > (14 << 20):
        # Only raise the scoped-VMEM limit when big tiles actually need it
        # (cap well under v7x's 64 MiB physical VMEM).
        vmem_limit_bytes = min(int(vmem_need * 5 // 4), 48 << 20)

    out_pl, out_mi = pl.pallas_call(
        _disc_kernel,
        out_shape=(jax.ShapeDtypeStruct((pack, n_rows), jnp.float32),
                   jax.ShapeDtypeStruct((pack, n_rows), jnp.float32)),
        grid=grid,
        in_specs=[
            pl.BlockSpec((pack, Dp), lambda i: (0, 0)),            # wc (resident)
            pl.BlockSpec(memory_space=pltpu.MemorySpace.SMEM),     # bias scalar
            pl.BlockSpec((tn, Dp), lambda i: (i, 0)),              # h_pl stream
            pl.BlockSpec((tn, Dp), lambda i: (i, 0)),              # h_mi stream
        ],
        # NOTE: the last grid step may be a partial block; its out-of-bounds
        # input rows read undefined data, but those only feed output columns
        # that Pallas drops when writing back the (pack, n_rows) arrays.
        out_specs=(pl.BlockSpec((pack, tn), lambda i: (0, i)),
                   pl.BlockSpec((pack, tn), lambda i: (0, i))),
        compiler_params=pltpu.CompilerParams(
            dimension_semantics=("parallel",),
            vmem_limit_bytes=vmem_limit_bytes),
    )(wc_p, b1, h_pl2, h_mi2)

    # Un-pack: out[p, k] is the score of node pack*k + p.
    sc_1 = out_pl.T.reshape(N)
    sc_2 = out_mi.T.reshape(N)
    if s_bias1 is not None:
        sc_1 = sc_1 + s_bias1
    if s_bias2 is not None:
        sc_2 = sc_2 + s_bias2
    # == torch.cat((sc_1, sc_2), dim=0)
    return jnp.concatenate([sc_1, sc_2], axis=0)


def init_params(key, n_h):
    # xavier_uniform_ on the Bilinear weight (1, n_h, n_h):
    # fan_in = n_h * n_h, fan_out = 1 * n_h
    fan_in = n_h * n_h
    fan_out = n_h
    bound = jnp.sqrt(6.0 / (fan_in + fan_out))
    W = jax.random.uniform(key, (1, n_h, n_h), jnp.float32, minval=-bound, maxval=bound)
    b = jnp.zeros((1,), jnp.float32)
    return W, b


# TODO(synk): the GAT layers' DGL NodeFlow sampling / per-edge softmax message
# passing is host-side, data-dependent graph bookkeeping with no clean dense
# Pallas mapping here; this kernel covers the dense bilinear discriminator
# scoring path of the same KPGNN_incremental.py model.

if __name__ == "__main__":
    key = jax.random.PRNGKey(0)
    n_h = 64     # hidden dim
    N = 300      # nodes; not 128-aligned -> exercises the partial-block path

    k_w, k_c, k_p, k_m = jax.random.split(key, 4)
    W, b = init_params(k_w, n_h)
    c = jax.random.normal(k_c, (n_h,), jnp.float32)                        # summary vector
    h_pl = jax.random.normal(k_p, (N, n_h), jnp.float32).astype(jnp.bfloat16)
    h_mi = jax.random.normal(k_m, (N, n_h), jnp.float32).astype(jnp.bfloat16)

    logits = discriminator_forward(c, h_pl, h_mi, W, b)    # default (large) tiling
    logits = jax.block_until_ready(logits)

    # Pure-JAX reference (same bf16-rounded operands, f32 accumulation).
    wc_ref = (W.reshape(n_h, n_h) @ c).astype(jnp.bfloat16).astype(jnp.float32)
    ref = jnp.concatenate(
        [h_pl.astype(jnp.float32) @ wc_ref + b[0],
         h_mi.astype(jnp.float32) @ wc_ref + b[0]], axis=0)

    assert logits.shape == (2 * N,)
    assert jnp.allclose(logits, ref, atol=2e-2, rtol=2e-2)
    print("KERNEL_OK")
</pallas_src>

<mosaic_0001>
module attributes {stable_mosaic.version = 11 : i64} {
  func.func @_disc_kernel(%arg0: i32, %arg1: memref<2x128xbf16, #tpu.memory_space<vmem>>, %arg2: memref<1xf32, #tpu.memory_space<smem>>, %arg3: memref<256x128xbf16, #tpu.memory_space<vmem>>, %arg4: memref<256x128xbf16, #tpu.memory_space<vmem>>, %arg5: memref<2x256xf32, #tpu.memory_space<vmem>>, %arg6: memref<2x256xf32, #tpu.memory_space<vmem>>) attributes {dimension_semantics = [#tpu.dimension_semantics<parallel>], iteration_bounds = array<i64: 1>, scalar_prefetch = 0 : i64, scratch_operands = 0 : i64, tpu.core_type = #tpu.core_type<tc>, window_params = [{pipeline_mode = #tpu.pipeline_mode<synchronous>, transform_indices = @transform_0, window_bounds = array<i64: 2, 128>}, {transform_indices = @transform_1, window_bounds = array<i64: 1>}, {transform_indices = @transform_2, window_bounds = array<i64: 256, 128>}, {transform_indices = @transform_3, window_bounds = array<i64: 256, 128>}, {transform_indices = @transform_4, window_bounds = array<i64: 2, 256>}, {transform_indices = @transform_5, window_bounds = array<i64: 2, 256>}]} {
    %c0 = arith.constant 0 : index
    %0 = memref.load %arg2[%c0] : memref<1xf32, #tpu.memory_space<smem>>
    %c0_0 = arith.constant 0 : index
    %c0_1 = arith.constant 0 : index
    %1 = vector.load %arg1[%c0_0, %c0_1] : memref<2x128xbf16, #tpu.memory_space<vmem>>, vector<2x128xbf16>
    %c0_2 = arith.constant 0 : index
    %c0_3 = arith.constant 0 : index
    %2 = vector.load %arg3[%c0_2, %c0_3] : memref<256x128xbf16, #tpu.memory_space<vmem>>, vector<256x128xbf16>
    %cst = arith.constant dense<0.000000e+00> : vector<2x256xf32>
    %3 = tpu.matmul %1, %2, %cst {dimension_numbers = #tpu.dot_dimension_numbers<[1], [1], [0], [0], [0, 0, 1, 0], [], []>} : vector<2x128xbf16>, vector<256x128xbf16>, vector<2x256xf32> -> vector<2x256xf32>
    %4 = vector.broadcast %0 : f32 to vector<2x256xf32>
    %5 = arith.addf %3, %4 : vector<2x256xf32>
    %c0_4 = arith.constant 0 : index
    %c0_5 = arith.constant 0 : index
    %6 = vector.load %arg5[%c0_4, %c0_5] : memref<2x256xf32, #tpu.memory_space<vmem>>, vector<2x256xf32>
    tpu.vector_store %arg5[%c0_4, %c0_5], %5 {strides = array<i32>} : memref<2x256xf32, #tpu.memory_space<vmem>>, vector<2x256xf32>,
    %c0_6 = arith.constant 0 : index
    %c0_7 = arith.constant 0 : index
    %7 = vector.load %arg4[%c0_6, %c0_7] : memref<256x128xbf16, #tpu.memory_space<vmem>>, vector<256x128xbf16>
    %cst_8 = arith.constant dense<0.000000e+00> : vector<2x256xf32>
    %8 = tpu.matmul %1, %7, %cst_8 {dimension_numbers = #tpu.dot_dimension_numbers<[1], [1], [0], [0], [0, 0, 1, 0], [], []>} : vector<2x128xbf16>, vector<256x128xbf16>, vector<2x256xf32> -> vector<2x256xf32>
    %9 = vector.broadcast %0 : f32 to vector<2x256xf32>
    %10 = arith.addf %8, %9 : vector<2x256xf32>
    %c0_9 = arith.constant 0 : index
    %c0_10 = arith.constant 0 : index
    %11 = vector.load %arg6[%c0_9, %c0_10] : memref<2x256xf32, #tpu.memory_space<vmem>>, vector<2x256xf32>
    tpu.vector_store %arg6[%c0_9, %c0_10], %10 {strides = array<i32>} : memref<2x256xf32, #tpu.memory_space<vmem>>, vector<2x256xf32>,
    return
  }
  func.func @transform_0(%arg0: i32) -> (i32, i32) {
    %c0_i32 = arith.constant 0 : i32
    %c0_i32_0 = arith.constant 0 : i32
    %c0_i32_1 = arith.constant 0 : i32
    return %c0_i32, %c0_i32_0 : i32, i32
  }
  func.func @transform_1(%arg0: i32) -> i32 {
    %c0_i32 = arith.constant 0 : i32
    %c0_i32_0 = arith.constant 0 : i32
    return %c0_i32 : i32
  }
  func.func @transform_2(%arg0: i32) -> (i32, i32) {
    %c0_i32 = arith.constant 0 : i32
    %c0_i32_0 = arith.constant 0 : i32
    return %arg0, %c0_i32 : i32, i32
  }
  func.func @transform_3(%arg0: i32) -> (i32, i32) {
    %c0_i32 = arith.constant 0 : i32
    %c0_i32_0 = arith.constant 0 : i32
    return %arg0, %c0_i32 : i32, i32
  }
  func.func @transform_4(%arg0: i32) -> (i32, i32) {
    %c0_i32 = arith.constant 0 : i32
    %c0_i32_0 = arith.constant 0 : i32
    return %c0_i32, %arg0 : i32, i32
  }
  func.func @transform_5(%arg0: i32) -> (i32, i32) {
    %c0_i32 = arith.constant 0 : i32
    %c0_i32_0 = arith.constant 0 : i32
    return %c0_i32, %arg0 : i32, i32
  }
}

</mosaic_0001>

<bundles_post_ra>
// kernel: discriminator_forward.1
= control target key start
LH: loop header
LB: loop body
LE: loop exit
PB: predicated region body
PF: predicated region fallthrough
CT: control target
= control target key end

     0   :  { %s634_s2 = inlined_call_operand.vmem [shape: bf16[150,128], index: 2, kind: input, shape index: {}]   ;;  %s635_s3 = inlined_call_operand.vmem [shape: bf16[150,128], index: 3, kind: input, shape index: {}]   ;;  %s636_s0 = inlined_call_operand.vmem [shape: bf16[2,128], index: 0, kind: input, shape index: {}]   ;;  %s637_s1 = inlined_call_operand.<no memory space> [shape: f32[1], index: 1, kind: input, shape index: {}]   ;;  %s638_s4 = inlined_call_operand.vmem [shape: f32[2,150], index: 4, kind: output, shape index: {0}]   ;;  %s639_s5 = inlined_call_operand.vmem [shape: f32[2,150], index: 5, kind: output, shape index: {1}]  }
   0x1   :  { %v464_v0 = vld [vmem:[%s634_s2 + $0x40] sm:$0xff]   ;;  %v468_v4 = vld [vmem:[%s634_s2 + $0x48] sm:$0xff]   ;;  %v472_v8 = vld [vmem:[%s634_s2 + $0x50] sm:$0xff]   ;;  %v55_v33 = vstv %s637_s1 }
   0x2   :  { %v465_v1 = vld [vmem:[%s635_s3 + $0x40] sm:$0xff]   ;;  %428 = vmatprep.subr.bf16.mxu0 %v464_v0  ;;  %v469_v5 = vld [vmem:[%s635_s3 + $0x48] sm:$0xff]   ;;  %v473_v9 = vld [vmem:[%s635_s3 + $0x50] sm:$0xff]  }
   0x3   :  { %v466_v2 = vld [vmem:[%s634_s2] sm:$0xff]   ;;  %446 = vmatprep.subr.bf16.mxu1 %v465_v1  ;;  %v470_v6 = vld [vmem:[%s634_s2 + $0x8] sm:$0xff]   ;;  %v474_v10 = vld [vmem:[%s634_s2 + $0x10] sm:$0xff]  }
   0x4   :  { %v467_v3 = vld [vmem:[%s635_s3] sm:$0xff]   ;;  %429 = vmatpush3.bf16.xpose.msra.mxu0 %v466_v2  ;;  %v471_v7 = vld [vmem:[%s635_s3 + $0x8] sm:$0xff]   ;;  %v475_v11 = vld [vmem:[%s635_s3 + $0x10] sm:$0xff]  }
   0x5   :  { %447 = vmatpush3.bf16.xpose.msra.mxu1 %v467_v3  ;;  %430 = vmatprep.subr.bf16.mxu0 %v468_v4  ;;  %v476_v12 = vld [vmem:[%s634_s2 + $0x58] sm:$0xff]   ;;  %v480_v16 = vld [vmem:[%s634_s2 + $0x60] sm:$0xff]   ;;  %v484_v21 = vld [vmem:[%s634_s2 + $0x68] sm:$0xff]  }
   0x6   :  { %448 = vmatprep.subr.bf16.mxu1 %v469_v5  ;;  %v477_v13 = vld [vmem:[%s635_s3 + $0x58] sm:$0xff]   ;;  %v481_v17 = vld [vmem:[%s635_s3 + $0x60] sm:$0xff]   ;;  %v485_v22 = vld [vmem:[%s635_s3 + $0x68] sm:$0xff]  }
   0x7   :  { %v478_v14 = vld [vmem:[%s634_s2 + $0x18] sm:$0xff]   ;;  %v482_v18 = vld [vmem:[%s634_s2 + $0x20] sm:$0xff]   ;;  %v486_v23 = vld [vmem:[%s634_s2 + $0x28] sm:$0xff]  }
   0x8   :  { %v479_v15 = vld [vmem:[%s635_s3 + $0x18] sm:$0xff]   ;;  %v22_v19 = vld [vmem:[%s636_s0] sm:$0x1]  ;;  %v487_v24 = vld [vmem:[%s635_s3 + $0x28] sm:$0xff]  }
   0x9   :  { %v483_v20 = vld [vmem:[%s635_s3 + $0x20] sm:$0xff]   ;;  %444 = vmatprep.mubr.bf16.mxu0 %v22_v19  ;;  %462 = vmatprep.mubr.bf16.mxu1 %v22_v19  ;;  %v488_v25 = vld [vmem:[%s634_s2 + $0x70] sm:$0xff]   ;;  %v492_v29 = vld [vmem:[%s634_s2 + $0x78] sm:$0xff]  }
   0xa   :  { %v489_v26 = vld [vmem:[%s635_s3 + $0x70] sm:$0xff]   ;;  %v493_v30 = vld [vmem:[%s635_s3 + $0x78] sm:$0xff]  }
   0xb   :  { %v490_v27 = vld [vmem:[%s634_s2 + $0x30] sm:$0xff]   ;;  %v494_v31 = vld [vmem:[%s634_s2 + $0x38] sm:$0xff]  }
   0xc   :  { %431 = vmatpush3.bf16.xpose.msra.mxu0 %v470_v6  ;;  %v491_v28 = vld [vmem:[%s635_s3 + $0x30] sm:$0xff]   ;;  %v495_v32 = vld [vmem:[%s635_s3 + $0x38] sm:$0xff]  }
   0xd   :  { %449 = vmatpush3.bf16.xpose.msra.mxu1 %v471_v7  ;;  %432 = vmatprep.subr.bf16.mxu0 %v472_v8 }
   0xe   :  { %450 = vmatprep.subr.bf16.mxu1 %v473_v9 }
  0x14   :  { %433 = vmatpush3.bf16.xpose.msra.mxu0 %v474_v10 }
  0x15   :  { %451 = vmatpush3.bf16.xpose.msra.mxu1 %v475_v11  ;;  %434 = vmatprep.subr.bf16.mxu0 %v476_v12 }
  0x16   :  { %452 = vmatprep.subr.bf16.mxu1 %v477_v13 }
  0x1c   :  { %435 = vmatpush3.bf16.xpose.msra.mxu0 %v478_v14 }
  0x1d   :  { %453 = vmatpush3.bf16.xpose.msra.mxu1 %v479_v15  ;;  %436 = vmatprep.subr.bf16.mxu0 %v480_v16 }
  0x1e   :  { %454 = vmatprep.subr.bf16.mxu1 %v481_v17 }
  0x24   :  { %437 = vmatpush3.bf16.xpose.msra.mxu0 %v482_v18 }
  0x25   :  { %455 = vmatpush3.bf16.xpose.msra.mxu1 %v483_v20  ;;  %438 = vmatprep.subr.bf16.mxu0 %v484_v21 }
  0x26   :  { %456 = vmatprep.subr.bf16.mxu1 %v485_v22 }
  0x2c   :  { %439 = vmatpush3.bf16.xpose.msra.mxu0 %v486_v23 }
  0x2d   :  { %457 = vmatpush3.bf16.xpose.msra.mxu1 %v487_v24  ;;  %440 = vmatprep.subr.bf16.mxu0 %v488_v25 }
  0x2e   :  { %458 = vmatprep.subr.bf16.mxu1 %v489_v26 }
  0x34   :  { %441 = vmatpush3.bf16.xpose.msra.mxu0 %v490_v27 }
  0x35   :  { %459 = vmatpush3.bf16.xpose.msra.mxu1 %v491_v28  ;;  %442 = vmatprep.subr.bf16.mxu0 %v492_v29 }
  0x36   :  { %460 = vmatprep.subr.bf16.mxu1 %v493_v30 }
  0x3c   :  { %443 = vmatpush3.bf16.xpose.msra.mxu0 %v494_v31 }
  0x3d   :  { %461 = vmatpush3.bf16.xpose.msra.mxu1 %v495_v32 }
  0x43   :  { %445 = vmatmul.mubr.bf16.vlgmr.msra.gmra.mrb[0].mxu0 %v22_v19 }
  0x44   :  { %463 = vmatmul.mubr.bf16.vlgmr.msra.gmra.mrb[0].mxu1 %v22_v19 }
 0x116   :  { %v186_v34 = vpop.f32.mrb[0].mxu0 }
 0x117   :  { %v187_v35 = vadd.f32 %v186_v34, %v55_v33  ;;  %v367_v36 = vpop.f32.mrb[0].mxu1  ;;  %v188_v37 = vpop.f32.mrb[1].mxu0 }
 0x118   :  { %v368_v38 = vadd.f32 %v367_v36, %v55_v33  ;;  %v189_v39 = vadd.f32 %v188_v37, %v55_v33  ;;  %v369_v40 = vpop.f32.mrb[1].mxu1  ;;  %v190_v41 = vpop.f32.mrb[2].mxu0 }
 0x119   :  { %v370_v42 = vadd.f32 %v369_v40, %v55_v33  ;;  %v371_v43 = vpop.f32.mrb[2].mxu1  ;;  %v191_v44 = vpop.f32.mrb[3].mxu0 }
 0x11a   :  { %v195_v45 = vcombine.low %v187_v35, %v189_v39  ;;  %v372_v46 = vpop.f32.mrb[3].mxu1 }
 0x11b   :  { %v376_v47 = vcombine.low %v368_v38, %v370_v42 }
 0x11c   :  { %410 = vst.sshfl [vmem:[%s638_s4] sm:$0x33 pattern:$0x76325410] %v195_v45 }
 0x11d   :  { %427 = vst.sshfl [vmem:[%s639_s5] sm:$0x33 pattern:$0x76325410] %v376_v47 }

</bundles_post_ra>
